<compile_context>
chip_gen: v6e
topology: v6e:2x2x1
jax: 0.10.0
libtpu: 0.0.40
codegen_flags: <defaults>
</compile_context>

<pallas_src>
import jax
import jax.numpy as jnp
from jax.experimental import pallas as pl
from jax.experimental.pallas import tpu as pltpu

_IN, _H1, _H2 = 784, 256, 128


def _tpu_budget():
    """Chip-aware (max batch-tile rows, vmem_limit_bytes) with a safe v7x fallback."""
    try:
        vmem = pltpu.get_tpu_info().vmem_capacity_bytes
    except Exception:  # no device / API drift: assume the smallest VMEM (v7x, 64 MiB/TC)
        vmem = 64 << 20
    if vmem >= (100 << 20):   # v5e / v6e: 128 MiB VMEM, slowest HBM -> largest tiles
        return 4096, 64 << 20
    return 2048, 48 << 20     # v7x-class: 64 MiB VMEM -> cap tiles, keep headroom


_TB_MAX, _VMEM_LIMIT = _tpu_budget()


def _discriminator_kernel(x_ref, w1_ref, b1_ref, w2_ref, b2_ref, w3_ref, b3_ref, o_ref):
    # Layer 1: Linear(784, 256) + LeakyReLU(0.2).  bf16 MXU operands, f32 accumulate.
    x = x_ref[...]
    if x.dtype != jnp.bfloat16:          # static; no-op when a bf16 image stream is fed
        x = x.astype(jnp.bfloat16)
    h = jnp.dot(x, w1_ref[...], preferred_element_type=jnp.float32) + b1_ref[...]
    h = jnp.where(h > 0.0, h, 0.2 * h)

    # Layer 2: Linear(256, 128) + LeakyReLU(0.2).
    h = jnp.dot(h.astype(jnp.bfloat16), w2_ref[...],
                preferred_element_type=jnp.float32) + b2_ref[...]
    h = jnp.where(h > 0.0, h, 0.2 * h)

    # Layer 3: Linear(128, 1) as VPU multiply + lane reduce, then stable Sigmoid.
    w3 = w3_ref[...].astype(jnp.float32)                          # (1, 128)
    z = jnp.sum(h * w3, axis=-1, keepdims=True) + b3_ref[...]     # (tb, 1) f32
    ez = jnp.exp(-jnp.abs(z))                                     # in (0, 1], no overflow
    sig = jnp.where(z >= 0.0, 1.0 / (1.0 + ez), ez / (1.0 + ez))
    o_ref[...] = sig.astype(o_ref.dtype)


def _choose_batch_tiling(B):
    """Pick (tile_rows, padded_batch, num_tiles): big tiles, 8-row aligned, even count."""
    if B <= _TB_MAX:
        return B, B, 1                          # single block == full array (always legal)
    tiles = pl.cdiv(B, _TB_MAX)
    tiles += tiles & 1                          # even tile count -> 2-TC balance on v7x
    tb = ((-(-B // tiles)) + 7) // 8 * 8        # ceil(B/tiles), rounded up to 8 sublanes
    return tb, tb * tiles, tiles


@jax.jit
def discriminator_forward(img, params):
    """img: (B, 1, 28, 28) float32 or bfloat16, NCHW (like PyTorch).
    Returns (B, 1) float32 in [0, 1]."""
    w1, b1, w2, b2, w3, b3 = params
    B = img.shape[0]
    # Keep the producer's dtype: a bf16 image stream halves the dominant HBM traffic.
    x = img.reshape(B, -1)                       # (B, 784); contiguous view, free

    tb, b_pad, n_tiles = _choose_batch_tiling(B)
    if b_pad != B:
        x = jnp.pad(x, ((0, b_pad - B), (0, 0)))
    grid = (n_tiles,)

    const = lambda shape: pl.BlockSpec(shape, lambda i: (0,) * len(shape))

    flops = 2 * b_pad * (_IN * _H1 + _H1 * _H2 + _H2)
    bytes_accessed = (
        b_pad * _IN * x.dtype.itemsize           # x stream (dominant)
        + (_IN * _H1 + _H1 * _H2 + _H2) * 2      # weights (bf16, resident)
        + (_H1 + _H2 + 1) * 4                    # biases (f32)
        + b_pad * 4                              # output (f32)
    )

    out = pl.pallas_call(
        _discriminator_kernel,
        out_shape=jax.ShapeDtypeStruct((b_pad, 1), jnp.float32),
        grid=grid,
        in_specs=[
            pl.BlockSpec((tb, _IN), lambda i: (i, 0)),   # x: tiled over batch
            const(w1.shape), const(b1.shape),            # weights/biases: resident
            const(w2.shape), const(b2.shape),
            const(w3.shape), const(b3.shape),
        ],
        out_specs=pl.BlockSpec((tb, 1), lambda i: (i, 0)),
        compiler_params=pltpu.CompilerParams(
            dimension_semantics=("parallel",),           # megacore batch sharding on v7x
            vmem_limit_bytes=_VMEM_LIMIT,
        ),
        cost_estimate=pl.CostEstimate(
            flops=flops, transcendentals=b_pad, bytes_accessed=bytes_accessed),
    )(x, w1, b1, w2, b2, w3, b3)
    return out[:B]                               # drop padded rows (never reduced over)


def init_params(key):
    """nn.Linear-style init (U(+/- 1/sqrt(fan_in))).
    w1/w2 stored transposed as (in, out); w3 stored as the PyTorch (out=1, in=128) row.
    Weights are bf16 (halves weight DMA, feeds the MXU bf16 path); biases stay f32.
    Note: this is a deliberate bf16-level precision trade vs. a true f32 PyTorch Linear."""
    specs = [(_IN, _H1, (_IN, _H1)), (_H1, _H2, (_H1, _H2)), (_H2, 1, (1, _H2))]
    params = []
    for fan_in, fan_out, w_shape in specs:
        key, kw, kb = jax.random.split(key, 3)
        bound = 1.0 / jnp.sqrt(float(fan_in))
        w = jax.random.uniform(kw, w_shape, jnp.float32, -bound, bound).astype(jnp.bfloat16)
        b = jax.random.uniform(kb, (1, fan_out), jnp.float32, -bound, bound)
        params += [w, b]
    return tuple(params)


def _reference_forward(img, params):
    """Pure-JAX reference using the identical mixed-precision recipe as the kernel."""
    w1, b1, w2, b2, w3, b3 = params
    x = img.reshape(img.shape[0], -1).astype(jnp.bfloat16)
    h = jnp.dot(x, w1, preferred_element_type=jnp.float32) + b1
    h = jnp.where(h > 0.0, h, 0.2 * h)
    h = jnp.dot(h.astype(jnp.bfloat16), w2, preferred_element_type=jnp.float32) + b2
    h = jnp.where(h > 0.0, h, 0.2 * h)
    z = jnp.sum(h * w3.astype(jnp.float32), axis=-1, keepdims=True) + b3
    ez = jnp.exp(-jnp.abs(z))
    return jnp.where(z >= 0.0, 1.0 / (1.0 + ez), ez / (1.0 + ez))


def _check(img, params):
    out = jax.block_until_ready(discriminator_forward(img, params))
    ref = _reference_forward(img, params)
    B = img.shape[0]
    assert out.shape == (B, 1), out.shape
    assert bool(jnp.all(jnp.isfinite(out)))
    assert bool(jnp.all((out >= 0.0) & (out <= 1.0)))   # f32 sigmoid may saturate at ends
    assert jnp.allclose(out, ref, atol=2e-3, rtol=2e-3), "mismatch vs reference"


if __name__ == "__main__":
    key = jax.random.PRNGKey(0)
    key, k_small, k_big = jax.random.split(key, 3)
    params = init_params(key)

    # Small deterministic check (single-tile path), NCHW like PyTorch.
    img_small = jax.random.normal(k_small, (8, 1, 28, 28), jnp.float32)
    _check(img_small, params)

    # Multi-tile / padded-batch path (exercises the batch grid + even-tile logic).
    img_big = jax.random.normal(k_big, (2600, 1, 28, 28), jnp.float32)
    _check(img_big, params)

    print("KERNEL_OK")
</pallas_src>

<mosaic_0001>
module attributes {stable_mosaic.version = 11 : i64} {
  func.func @_discriminator_kernel(%arg0: i32, %arg1: memref<8x784xf32, #tpu.memory_space<vmem>>, %arg2: memref<784x256xbf16, #tpu.memory_space<vmem>>, %arg3: memref<1x256xf32, #tpu.memory_space<vmem>>, %arg4: memref<256x128xbf16, #tpu.memory_space<vmem>>, %arg5: memref<1x128xf32, #tpu.memory_space<vmem>>, %arg6: memref<1x128xbf16, #tpu.memory_space<vmem>>, %arg7: memref<1x1xf32, #tpu.memory_space<vmem>>, %arg8: memref<8x1xf32, #tpu.memory_space<vmem>>) attributes {dimension_semantics = [#tpu.dimension_semantics<parallel>], iteration_bounds = array<i64: 1>, scalar_prefetch = 0 : i64, scratch_operands = 0 : i64, tpu.core_type = #tpu.core_type<tc>, window_params = [{transform_indices = @transform_0, window_bounds = array<i64: 8, 784>}, {pipeline_mode = #tpu.pipeline_mode<synchronous>, transform_indices = @transform_1, window_bounds = array<i64: 784, 256>}, {pipeline_mode = #tpu.pipeline_mode<synchronous>, transform_indices = @transform_2, window_bounds = array<i64: 1, 256>}, {pipeline_mode = #tpu.pipeline_mode<synchronous>, transform_indices = @transform_3, window_bounds = array<i64: 256, 128>}, {pipeline_mode = #tpu.pipeline_mode<synchronous>, transform_indices = @transform_4, window_bounds = array<i64: 1, 128>}, {pipeline_mode = #tpu.pipeline_mode<synchronous>, transform_indices = @transform_5, window_bounds = array<i64: 1, 128>}, {pipeline_mode = #tpu.pipeline_mode<synchronous>, transform_indices = @transform_6, window_bounds = array<i64: 1, 1>}, {transform_indices = @transform_7, window_bounds = array<i64: 8, 1>}]} {
    %c0 = arith.constant 0 : index
    %c0_0 = arith.constant 0 : index
    %0 = vector.load %arg1[%c0, %c0_0] : memref<8x784xf32, #tpu.memory_space<vmem>>, vector<8x784xf32>
    %1 = arith.truncf %0 : vector<8x784xf32> to vector<8x784xbf16>
    %c0_1 = arith.constant 0 : index
    %c0_2 = arith.constant 0 : index
    %2 = vector.load %arg2[%c0_1, %c0_2] : memref<784x256xbf16, #tpu.memory_space<vmem>>, vector<784x256xbf16>
    %cst = arith.constant dense<0.000000e+00> : vector<8x256xf32>
    %3 = tpu.matmul %1, %2, %cst {dimension_numbers = #tpu.dot_dimension_numbers<[1], [0], [0], [1], [0, 0, 1, 1], [], []>} : vector<8x784xbf16>, vector<784x256xbf16>, vector<8x256xf32> -> vector<8x256xf32>
    %c0_3 = arith.constant 0 : index
    %c0_4 = arith.constant 0 : index
    %4 = vector.load %arg3[%c0_3, %c0_4] : memref<1x256xf32, #tpu.memory_space<vmem>>, vector<1x256xf32>
    %5 = vector.broadcast %4 : vector<1x256xf32> to vector<8x256xf32>
    %6 = arith.addf %3, %5 : vector<8x256xf32>
    %cst_5 = arith.constant 0.000000e+00 : f32
    %7 = vector.broadcast %cst_5 : f32 to vector<8x256xf32>
    %8 = arith.cmpf ogt, %6, %7 : vector<8x256xf32>
    %cst_6 = arith.constant 2.000000e-01 : f32
    %9 = vector.broadcast %cst_6 : f32 to vector<8x256xf32>
    %10 = arith.mulf %9, %6 : vector<8x256xf32>
    %11 = arith.select %8, %6, %10 : vector<8x256xi1>, vector<8x256xf32>
    %12 = arith.truncf %11 : vector<8x256xf32> to vector<8x256xbf16>
    %c0_7 = arith.constant 0 : index
    %c0_8 = arith.constant 0 : index
    %13 = vector.load %arg4[%c0_7, %c0_8] : memref<256x128xbf16, #tpu.memory_space<vmem>>, vector<256x128xbf16>
    %cst_9 = arith.constant dense<0.000000e+00> : vector<8x128xf32>
    %14 = tpu.matmul %12, %13, %cst_9 {dimension_numbers = #tpu.dot_dimension_numbers<[1], [0], [0], [1], [0, 0, 1, 1], [], []>} : vector<8x256xbf16>, vector<256x128xbf16>, vector<8x128xf32> -> vector<8x128xf32>
    %c0_10 = arith.constant 0 : index
    %c0_11 = arith.constant 0 : index
    %15 = vector.load %arg5[%c0_10, %c0_11] : memref<1x128xf32, #tpu.memory_space<vmem>>, vector<1x128xf32>
    %16 = vector.broadcast %15 : vector<1x128xf32> to vector<8x128xf32>
    %17 = arith.addf %14, %16 : vector<8x128xf32>
    %cst_12 = arith.constant 0.000000e+00 : f32
    %18 = vector.broadcast %cst_12 : f32 to vector<8x128xf32>
    %19 = arith.cmpf ogt, %17, %18 : vector<8x128xf32>
    %cst_13 = arith.constant 2.000000e-01 : f32
    %20 = vector.broadcast %cst_13 : f32 to vector<8x128xf32>
    %21 = arith.mulf %20, %17 : vector<8x128xf32>
    %22 = arith.select %19, %17, %21 : vector<8x128xi1>, vector<8x128xf32>
    %c0_14 = arith.constant 0 : index
    %c0_15 = arith.constant 0 : index
    %23 = vector.load %arg6[%c0_14, %c0_15] : memref<1x128xbf16, #tpu.memory_space<vmem>>, vector<1x128xbf16>
    %24 = arith.extf %23 : vector<1x128xbf16> to vector<1x128xf32>
    %25 = vector.broadcast %24 : vector<1x128xf32> to vector<8x128xf32>
    %26 = arith.mulf %22, %25 : vector<8x128xf32>
    %cst_16 = arith.constant dense<0.000000e+00> : vector<8xf32>
    %27 = vector.multi_reduction <add>, %26, %cst_16 [1] : vector<8x128xf32> to vector<8xf32>
    %28 = vector.shape_cast %27 : vector<8xf32> to vector<8x1xf32>
    %c0_17 = arith.constant 0 : index
    %c0_18 = arith.constant 0 : index
    %29 = vector.load %arg7[%c0_17, %c0_18] : memref<1x1xf32, #tpu.memory_space<vmem>>, vector<1x1xf32>
    %30 = vector.broadcast %29 : vector<1x1xf32> to vector<8x1xf32>
    %31 = arith.addf %28, %30 : vector<8x1xf32>
    %32 = math.absf %31 : vector<8x1xf32>
    %cst_19 = arith.constant 0.000000e+00 : f32
    %33 = vector.broadcast %cst_19 : f32 to vector<8x1xf32>
    %34 = arith.subf %33, %32 : vector<8x1xf32>
    %35 = math.exp %34 : vector<8x1xf32>
    %cst_20 = arith.constant 0.000000e+00 : f32
    %36 = vector.broadcast %cst_20 : f32 to vector<8x1xf32>
    %37 = arith.cmpf oge, %31, %36 : vector<8x1xf32>
    %cst_21 = arith.constant 1.000000e+00 : f32
    %38 = vector.broadcast %cst_21 : f32 to vector<8x1xf32>
    %39 = arith.addf %38, %35 : vector<8x1xf32>
    %cst_22 = arith.constant 1.000000e+00 : f32
    %40 = vector.broadcast %cst_22 : f32 to vector<8x1xf32>
    %41 = arith.divf %40, %39 : vector<8x1xf32>
    %cst_23 = arith.constant 1.000000e+00 : f32
    %42 = vector.broadcast %cst_23 : f32 to vector<8x1xf32>
    %43 = arith.addf %42, %35 : vector<8x1xf32>
    %44 = arith.divf %35, %43 : vector<8x1xf32>
    %45 = arith.select %37, %41, %44 : vector<8x1xi1>, vector<8x1xf32>
    %c0_24 = arith.constant 0 : index
    %c0_25 = arith.constant 0 : index
    %46 = vector.load %arg8[%c0_24, %c0_25] : memref<8x1xf32, #tpu.memory_space<vmem>>, vector<8x1xf32>
    tpu.vector_store %arg8[%c0_24, %c0_25], %45 {strides = array<i32>} : memref<8x1xf32, #tpu.memory_space<vmem>>, vector<8x1xf32>,
    return
  }
  func.func @transform_0(%arg0: i32) -> (i32, i32) {
    %c0_i32 = arith.constant 0 : i32
    %c0_i32_0 = arith.constant 0 : i32
    return %arg0, %c0_i32 : i32, i32
  }
  func.func @transform_1(%arg0: i32) -> (i32, i32) {
    %c0_i32 = arith.constant 0 : i32
    %c0_i32_0 = arith.constant 0 : i32
    %c0_i32_1 = arith.constant 0 : i32
    return %c0_i32, %c0_i32_0 : i32, i32
  }
  func.func @transform_2(%arg0: i32) -> (i32, i32) {
    %c0_i32 = arith.constant 0 : i32
    %c0_i32_0 = arith.constant 0 : i32
    %c0_i32_1 = arith.constant 0 : i32
    return %c0_i32, %c0_i32_0 : i32, i32
  }
  func.func @transform_3(%arg0: i32) -> (i32, i32) {
    %c0_i32 = arith.constant 0 : i32
    %c0_i32_0 = arith.constant 0 : i32
    %c0_i32_1 = arith.constant 0 : i32
    return %c0_i32, %c0_i32_0 : i32, i32
  }
  func.func @transform_4(%arg0: i32) -> (i32, i32) {
    %c0_i32 = arith.constant 0 : i32
    %c0_i32_0 = arith.constant 0 : i32
    %c0_i32_1 = arith.constant 0 : i32
    return %c0_i32, %c0_i32_0 : i32, i32
  }
  func.func @transform_5(%arg0: i32) -> (i32, i32) {
    %c0_i32 = arith.constant 0 : i32
    %c0_i32_0 = arith.constant 0 : i32
    %c0_i32_1 = arith.constant 0 : i32
    return %c0_i32, %c0_i32_0 : i32, i32
  }
  func.func @transform_6(%arg0: i32) -> (i32, i32) {
    %c0_i32 = arith.constant 0 : i32
    %c0_i32_0 = arith.constant 0 : i32
    %c0_i32_1 = arith.constant 0 : i32
    return %c0_i32, %c0_i32_0 : i32, i32
  }
  func.func @transform_7(%arg0: i32) -> (i32, i32) {
    %c0_i32 = arith.constant 0 : i32
    %c0_i32_0 = arith.constant 0 : i32
    return %arg0, %c0_i32 : i32, i32
  }
}

</mosaic_0001>

<bundles_post_ra>
// kernel: discriminator_forward.1
= control target key start
LH: loop header
LB: loop body
LE: loop exit
PB: predicated region body
PF: predicated region fallthrough
CT: control target
= control target key end

     0   :  { %s1755_s0 = inlined_call_operand.vmem [shape: f32[8,784], index: 0, kind: input, shape index: {}]   ;;  %s1756_s1 = inlined_call_operand.vmem [shape: bf16[784,256], index: 1, kind: input, shape index: {}]   ;;  %s1757_s2 = inlined_call_operand.vmem [shape: f32[1,256], index: 2, kind: input, shape index: {}]   ;;  %s1758_s3 = inlined_call_operand.hbm [shape: bf16[256,128], index: 3, kind: input, shape index: {}]   ;;  %s1759_s4 = inlined_call_operand.vmem [shape: f32[1,128], index: 4, kind: input, shape index: {}]   ;;  %s1760_s5 = inlined_call_operand.vmem [shape: bf16[1,128], index: 5, kind: input, shape index: {}]   ;;  %s1761_s6 = inlined_call_operand.<no memory space> [shape: f32[1,1], index: 6, kind: input, shape index: {}]   ;;  %s1762_s7 = inlined_call_operand.vmem [shape: f32[8,1], index: 7, kind: output, shape index: {}]  }
   0x1   :  { %v12_v0 = vstv %s1761_s6 }
   0x2   :  { %13 = vst [vmem:[#allocation2] sm:$0x1] %v12_v0 }
   0x3   :  { %14 = vsyncpa [#allocation4], 0  ;;  %s1377_s26 = smov [#allocation3]  }
   0x4   :  { %s26_s27 = sshll.u32 %s1377_s26, 4  ;;  %s27_s27 = int_to_ptr.vmem [resolvable:$true] %s26_s27 }
   0x5   :  { %s1363_s28 = scalar_lea.vmem %s27_s27, 2048  ;;  %p1368_p1 = scmp.lt.s32.totalorder %s27_s27, %s27_s27 }
   0x6   :  { %p1364_p0 = scmp.ne.s32.totalorder %s27_s27, %s1363_s28  ;;  %p1369_p2 = scmp.lt.s32.totalorder %s1363_s28, %s1363_s28 }
   0x8   :  { %p1370_p3 = por %p1369_p2, %p1368_p1 }
   0xa   :  { %p1371_p4 = pnand %p1370_p3, %p1364_p0 }
   0xc   :  { %1374 = shalt.err (!%p1371_p4)
}
   0xd   :  { %s1378_s29 = smov 64   ;;  %s1379_s30 = smov 4  }
   0xe   :  { %32 = dma.hbm_to_vmem [thread:$0]  %s1758_s3, 2048, %s27_s27, [#allocation4], %s1378_s29, %s1378_s29, %s1379_s30  }
   0xf   :  { %1375 = dma.done.wait [#allocation4], 2048  }
  0x10   :  { %1376 = vsyncadd [#allocation4], 4294965248  ;;  %v1188_v1 = vld [vmem:[%s1756_s1 + $0x74] ss:$8 sps:$4 sm:$0xff]   ;;  %v1190_v2 = vld [vmem:[%s1756_s1 + $0x70] ss:$8 sps:$4 sm:$0xff]  }
  0x11   :  { %661 = vmatprep.subr.bf16.mxu0 %v1188_v1  ;;  %v1191_v3 = vld [vmem:[%s1756_s1 + $0x174] ss:$8 sps:$4 sm:$0xff]   ;;  %v1193_v4 = vld [vmem:[%s1756_s1 + $0x170] ss:$8 sps:$4 sm:$0xff]   ;;  %v1194_v5 = vld [vmem:[%s1756_s1 + $0x64] ss:$8 sps:$4 sm:$0xff]  }
  0x12   :  { %662 = vmatpush1.bf16.msra.mxu0 %v1190_v2  ;;  %v1196_v6 = vld [vmem:[%s1756_s1 + $0x60] ss:$8 sps:$4 sm:$0xff]   ;;  %702 = vmatprep.subr.bf16.mxu1 %v1191_v3  ;;  %v1197_v7 = vld [vmem:[%s1756_s1 + $0x164] ss:$8 sps:$4 sm:$0xff]   ;;  %v1200_v9 = vld [vmem:[%s1756_s1 + $0x54] ss:$8 sps:$4 sm:$0xff]  }
  0x13   :  { %703 = vmatpush1.bf16.msra.mxu1 %v1193_v4  ;;  %663 = vmatprep.subr.bf16.mxu0 %v1194_v5  ;;  %v1199_v8 = vld [vmem:[%s1756_s1 + $0x160] ss:$8 sps:$4 sm:$0xff]   ;;  %v1202_v10 = vld [vmem:[%s1756_s1 + $0x50] ss:$8 sps:$4 sm:$0xff]   ;;  %v1203_v11 = vld [vmem:[%s1756_s1 + $0x154] ss:$8 sps:$4 sm:$0xff]  }
  0x14   :  { %704 = vmatprep.subr.bf16.mxu1 %v1197_v7  ;;  %v1206_v12 = vld [vmem:[%s1756_s1 + $0x44] ss:$8 sps:$4 sm:$0xff]   ;;  %v1205_v13 = vld [vmem:[%s1756_s1 + $0x150] ss:$8 sps:$4 sm:$0xff]   ;;  %v1208_v15 = vld [vmem:[%s1756_s1 + $0x40] ss:$8 sps:$4 sm:$0xff]  }
  0x15   :  { %v1209_v14 = vld [vmem:[%s1756_s1 + $0x144] ss:$8 sps:$4 sm:$0xff]   ;;  %v1212_v16 = vld [vmem:[%s1756_s1 + $0x34] ss:$8 sps:$4 sm:$0xff]   ;;  %v1211_v17 = vld [vmem:[%s1756_s1 + $0x140] ss:$8 sps:$4 sm:$0xff]  }
  0x16   :  { %664 = vmatpush1.bf16.msra.mxu0 %v1196_v6  ;;  %v1215_v18 = vld [vmem:[%s1756_s1 + $0x134] ss:$8 sps:$4 sm:$0xff]   ;;  %v1214_v19 = vld [vmem:[%s1756_s1 + $0x30] ss:$8 sps:$4 sm:$0xff]   ;;  %v1218_v20 = vld [vmem:[%s1756_s1 + $0x24] ss:$8 sps:$4 sm:$0xff]  }
  0x17   :  { %665 = vmatprep.subr.bf16.mxu0 %v1200_v9  ;;  %705 = vmatpush1.bf16.msra.mxu1 %v1199_v8  ;;  %v1217_v21 = vld [vmem:[%s1756_s1 + $0x130] ss:$8 sps:$4 sm:$0xff]   ;;  %v1221_v22 = vld [vmem:[%s1756_s1 + $0x124] ss:$8 sps:$4 sm:$0xff]   ;;  %v1220_v23 = vld [vmem:[%s1756_s1 + $0x20] ss:$8 sps:$4 sm:$0xff]  }
  0x18   :  { %706 = vmatprep.subr.bf16.mxu1 %v1203_v11  ;;  %v1224_v24 = vld [vmem:[%s1756_s1 + $0x14] ss:$8 sps:$4 sm:$0xff]   ;;  %v1223_v25 = vld [vmem:[%s1756_s1 + $0x120] ss:$8 sps:$4 sm:$0xff]   ;;  %v1226_v27 = vld [vmem:[%s1756_s1 + $0x10] ss:$8 sps:$4 sm:$0xff]  }
  0x19   :  { %v1227_v26 = vld [vmem:[%s1756_s1 + $0x114] ss:$8 sps:$4 sm:$0xff]   ;;  %v1230_v28 = vld [vmem:[%s1756_s1 + $0x4] ss:$8 sps:$4 sm:$0xff]   ;;  %v1229_v29 = vld [vmem:[%s1756_s1 + $0x110] ss:$8 sps:$4 sm:$0xff]  }
  0x1a   :  { %666 = vmatpush1.bf16.msra.mxu0 %v1202_v10  ;;  %v1233_v30 = vld [vmem:[%s1756_s1 + $0x104] ss:$8 sps:$4 sm:$0xff]   ;;  %v1232_v31 = vld [vmem:[%s1756_s1] ss:$8 sps:$4 sm:$0xff]   ;;  %v1236_v32 = vld [vmem:[%s1756_s1 + $0xf4] ss:$8 sps:$4 sm:$0xff]  }
  0x1b   :  { %667 = vmatprep.subr.bf16.mxu0 %v1206_v12  ;;  %707 = vmatpush1.bf16.msra.mxu1 %v1205_v13  ;;  %v1235_v33 = vld [vmem:[%s1756_s1 + $0x100] ss:$8 sps:$4 sm:$0xff]   ;;  %v1239_v34 = vld [vmem:[%s1756_s1 + $0x1f4] ss:$8 sps:$4 sm:$0xff]   ;;  %v1238_v35 = vld [vmem:[%s1756_s1 + $0xf0] ss:$8 sps:$4 sm:$0xff]  }
  0x1c   :  { %708 = vmatprep.subr.bf16.mxu1 %v1209_v14  ;;  %v1242_v36 = vld [vmem:[%s1756_s1 + $0xe4] ss:$8 sps:$4 sm:$0xff]   ;;  %v1241_v37 = vld [vmem:[%s1756_s1 + $0x1f0] ss:$8 sps:$4 sm:$0xff]   ;;  %v1244_v39 = vld [vmem:[%s1756_s1 + $0xe0] ss:$8 sps:$4 sm:$0xff]  }
  0x1d   :  { %v1245_v38 = vld [vmem:[%s1756_s1 + $0x1e4] ss:$8 sps:$4 sm:$0xff]   ;;  %v1248_v40 = vld [vmem:[%s1756_s1 + $0xd4] ss:$8 sps:$4 sm:$0xff]   ;;  %v1247_v41 = vld [vmem:[%s1756_s1 + $0x1e0] ss:$8 sps:$4 sm:$0xff]  }
  0x1e   :  { %668 = vmatpush1.bf16.msra.mxu0 %v1208_v15  ;;  %v1251_v42 = vld [vmem:[%s1756_s1 + $0x1d4] ss:$8 sps:$4 sm:$0xff]   ;;  %v1250_v43 = vld [vmem:[%s1756_s1 + $0xd0] ss:$8 sps:$4 sm:$0xff]   ;;  %v1254_v44 = vld [vmem:[%s1756_s1 + $0xc4] ss:$8 sps:$4 sm:$0xff]  }
  0x1f   :  { %669 = vmatprep.subr.bf16.mxu0 %v1212_v16  ;;  %709 = vmatpush1.bf16.msra.mxu1 %v1211_v17  ;;  %v1253_v45 = vld [vmem:[%s1756_s1 + $0x1d0] ss:$8 sps:$4 sm:$0xff]   ;;  %v1257_v46 = vld [vmem:[%s1756_s1 + $0x1c4] ss:$8 sps:$4 sm:$0xff]   ;;  %v1256_v48 = vld [vmem:[%s1756_s1 + $0xc0] ss:$8 sps:$4 sm:$0xff]  }
  0x20   :  { %710 = vmatprep.subr.bf16.mxu1 %v1215_v18  ;;  %v44_v47 = vld [vmem:[%s1755_s0 + $0x8] sm:$0xff]  ;;  %v1260_v50 = vld [vmem:[%s1756_s1 + $0xb4] ss:$8 sps:$4 sm:$0xff]   ;;  %v1262_v55 = vld [vmem:[%s1756_s1 + $0xb0] ss:$8 sps:$4 sm:$0xff]   ;;  %vm657_vm0 = vcmask 130048  }
  0x21   :  { %v51_v49 = vpack.c.bf16 %v44_v47, %v44_v47  ;;  %v46_v51 = vld [vmem:[%s1755_s0 + $0x18] sm:$0xff]  ;;  %v1259_v52 = vld [vmem:[%s1756_s1 + $0x1c0] ss:$8 sps:$4 sm:$0xff]   ;;  %v1266_v56 = vld [vmem:[%s1756_s1 + $0xa4] ss:$8 sps:$4 sm:$0xff]   ;;  %vm1038_vm4 = vcmask 7168  }
  0x22   :  { %670 = vmatpush1.bf16.msra.mxu0 %v1214_v19  ;;  %v53_v53 = vpack.c.bf16 %v46_v51, %v46_v51  ;;  %v1263_v54 = vld [vmem:[%s1756_s1 + $0x1b4] ss:$8 sps:$4 sm:$0xff]   ;;  %v1265_v57 = vld [vmem:[%s1756_s1 + $0x1b0] ss:$8 sps:$4 sm:$0xff]   ;;  %v1269_v58 = vld [vmem:[%s1756_s1 + $0x1a4] ss:$8 sps:$4 sm:$0xff]  }
  0x23   :  { %671 = vmatprep.subr.bf16.mxu0 %v1218_v20  ;;  %711 = vmatpush1.bf16.msra.mxu1 %v1217_v21  ;;  %v1268_v59 = vld [vmem:[%s1756_s1 + $0xa0] ss:$8 sps:$4 sm:$0xff]   ;;  %v1272_v60 = vld [vmem:[%s1756_s1 + $0x94] ss:$8 sps:$4 sm:$0xff]   ;;  %v1274_v63 = vld [vmem:[%s1756_s1 + $0x90] ss:$8 sps:$4 sm:$0xff]  }
  0x24   :  { %712 = vmatprep.subr.bf16.mxu1 %v1221_v22  ;;  %693 = vmatprep.mubr.bf16.mxu0 %v51_v49  ;;  %v1271_v61 = vld [vmem:[%s1756_s1 + $0x1a0] ss:$8 sps:$4 sm:$0xff]   ;;  %v1275_v62 = vld [vmem:[%s1756_s1 + $0x194] ss:$8 sps:$4 sm:$0xff]   ;;  %v1278_v0 = vld [vmem:[%s1756_s1 + $0x84] ss:$8 sps:$4 sm:$0xff]  }
  0x25   :  { %734 = vmatprep.mubr.bf16.mxu1 %v53_v53  ;;  %v1277_v1 = vld [vmem:[%s1756_s1 + $0x190] ss:$8 sps:$4 sm:$0xff]   ;;  %v1280_v2 = vld [vmem:[%s1756_s1 + $0x80] ss:$8 sps:$4 sm:$0xff]   ;;  %v1281_v3 = vld [vmem:[%s1756_s1 + $0x184] ss:$8 sps:$4 sm:$0xff]  }
  0x26   :  { %672 = vmatpush1.bf16.msra.mxu0 %v1220_v23  ;;  %v1283_v4 = vld [vmem:[%s1756_s1 + $0x180] ss:$8 sps:$4 sm:$0xff]   ;;  %v1286_v6 = vld [vmem:[%s1756_s1 + $0x274] ss:$8 sps:$4 sm:$0xff]   ;;  %v1284_v9 = vld [vmem:[%s1756_s1 + $0x270] ss:$8 sps:$4 sm:$0xff]  }
  0x27   :  { %673 = vmatprep.subr.bf16.mxu0 %v1224_v24  ;;  %713 = vmatpush1.bf16.msra.mxu1 %v1223_v25  ;;  %v43_v5 = vld [vmem:[%s1755_s0] sm:$0xff]  ;;  %v45_v7 = vld [vmem:[%s1755_s0 + $0x10] sm:$0xff]  ;;  %v48_v17 = vld [vmem:[%s1755_s0 + $0x28] sm:$0xff]  ;;  %v1380_v20 = vmov 0  }
  0x28   :  { %714 = vmatprep.subr.bf16.mxu1 %v1227_v26  ;;  %v50_v8 = vpack.c.bf16 %v43_v5, %v43_v5  ;;  %v1289_v10 = vld [vmem:[%s1756_s1 + $0x264] ss:$8 sps:$4 sm:$0xff]   ;;  %v52_v11 = vpack.c.bf16 %v45_v7, %v45_v7  ;;  %v1329_v12 = vld [vmem:[%s1756_s1 + $0x300] ss:$8 sps:$4 sm:$0xff]   ;;  %v1292_v15 = vld [vmem:[%s1756_s1 + $0x254] ss:$8 sps:$4 sm:$0xff]   ;;  %v55_v18 = vpack.c.bf16 %v48_v17, %v48_v17 }
  0x29   :  { %v1331_v13 = vld [vmem:[%s1756_s1 + $0x304] ss:$8 sps:$4 sm:$0xff]   ;;  %v1287_v14 = vld [vmem:[%s1756_s1 + $0x260] ss:$8 sps:$4 sm:$0xff]   ;;  %v49_v16 = vld [vmem:[%s1755_s0 + $0x30] sm:$0xff] }
  0x2a   :  { %674 = vmatpush1.bf16.msra.mxu0 %v1226_v27  ;;  %v1290_v19 = vld [vmem:[%s1756_s1 + $0x250] ss:$8 sps:$4 sm:$0xff]   ;;  %v1295_v21 = vld [vmem:[%s1756_s1 + $0x244] ss:$8 sps:$4 sm:$0xff]   ;;  %v56_v22 = vpack.c.bf16 %v49_v16, %v49_v16  ;;  %v1293_v23 = vld [vmem:[%s1756_s1 + $0x240] ss:$8 sps:$4 sm:$0xff]  }
  0x2b   :  { %675 = vmatprep.subr.bf16.mxu0 %v1230_v28  ;;  %715 = vmatpush1.bf16.msra.mxu1 %v1229_v29  ;;  %v1298_v24 = vld [vmem:[%s1756_s1 + $0x234] ss:$8 sps:$4 sm:$0xff]   ;;  %v1296_v25 = vld [vmem:[%s1756_s1 + $0x230] ss:$8 sps:$4 sm:$0xff]   ;;  %v1301_v26 = vld [vmem:[%s1756_s1 + $0x224] ss:$8 sps:$4 sm:$0xff]  }
  0x2c   :  { %716 = vmatprep.subr.bf16.mxu1 %v1233_v30  ;;  %v1299_v27 = vld [vmem:[%s1756_s1 + $0x220] ss:$8 sps:$4 sm:$0xff]   ;;  %v1304_v28 = vld [vmem:[%s1756_s1 + $0x214] ss:$8 sps:$4 sm:$0xff]   ;;  %v1302_v29 = vld [vmem:[%s1756_s1 + $0x210] ss:$8 sps:$4 sm:$0xff]  }
  0x2d   :  { %v1307_v30 = vld [vmem:[%s1756_s1 + $0x204] ss:$8 sps:$4 sm:$0xff]   ;;  %v1332_v47 = vld [vmem:[%s1756_s1 + $0x280] ss:$8 sps:$4 sm:$0xff]   ;;  %v1338_v53 = vld [vmem:[#allocation3 + $0x30] sm:$0xff]  }
  0x2e   :  { %676 = vmatpush1.bf16.msra.mxu0 %v1232_v31  ;;  %v1305_v31 = vld [vmem:[%s1756_s1 + $0x200] ss:$8 sps:$4 sm:$0xff]  }
  0x2f   :  { %677 = vmatprep.subr.bf16.mxu0 %v1236_v32  ;;  %717 = vmatpush1.bf16.msra.mxu1 %v1235_v33  ;;  %v1310_v32 = vld [vmem:[%s1756_s1 + $0x2f4] ss:$8 sps:$4 sm:$0xff]   ;;  %v1308_v33 = vld [vmem:[%s1756_s1 + $0x2f0] ss:$8 sps:$4 sm:$0xff]   ;;  %v155_v17 = vld [vmem:[%s1757_s2] sm:$0x3] }
  0x30   :  { %718 = vmatprep.subr.bf16.mxu1 %v1239_v34  ;;  %v1313_v34 = vld [vmem:[%s1756_s1 + $0x2e4] ss:$8 sps:$4 sm:$0xff]   ;;  %v1336_v51 = vld [vmem:[#allocation3 + $0x38] sm:$0xff]  }
  0x32   :  { %678 = vmatpush2.bf16.msra.mxu0 %v1238_v35  ;;  %v1311_v35 = vld [vmem:[%s1756_s1 + $0x2e0] ss:$8 sps:$4 sm:$0xff]  }
  0x33   :  { %679 = vmatprep.subr.bf16.mxu0 %v1242_v36  ;;  %719 = vmatpush2.bf16.msra.mxu1 %v1241_v37  ;;  %v1316_v36 = vld [vmem:[%s1756_s1 + $0x2d4] ss:$8 sps:$4 sm:$0xff]   ;;  %v1314_v37 = vld [vmem:[%s1756_s1 + $0x2d0] ss:$8 sps:$4 sm:$0xff]  }
  0x34   :  { %720 = vmatprep.subr.bf16.mxu1 %v1245_v38  ;;  %v1319_v38 = vld [vmem:[%s1756_s1 + $0x2c4] ss:$8 sps:$4 sm:$0xff]  }
  0x36   :  { %680 = vmatpush2.bf16.msra.mxu0 %v1244_v39  ;;  %v1317_v39 = vld [vmem:[%s1756_s1 + $0x2c0] ss:$8 sps:$4 sm:$0xff]  }
  0x37   :  { %681 = vmatprep.subr.bf16.mxu0 %v1248_v40  ;;  %721 = vmatpush2.bf16.msra.mxu1 %v1247_v41  ;;  %v1322_v40 = vld [vmem:[%s1756_s1 + $0x2b4] ss:$8 sps:$4 sm:$0xff]   ;;  %v1320_v41 = vld [vmem:[%s1756_s1 + $0x2b0] ss:$8 sps:$4 sm:$0xff]  }
  0x38   :  { %722 = vmatprep.subr.bf16.mxu1 %v1251_v42  ;;  %v1325_v42 = vld [vmem:[%s1756_s1 + $0x2a4] ss:$8 sps:$4 sm:$0xff]  }
  0x3a   :  { %682 = vmatpush2.bf16.msra.mxu0 %v1250_v43  ;;  %v1323_v43 = vld [vmem:[%s1756_s1 + $0x2a0] ss:$8 sps:$4 sm:$0xff]  }
  0x3b   :  { %683 = vmatprep.subr.bf16.mxu0 %v1254_v44  ;;  %723 = vmatpush2.bf16.msra.mxu1 %v1253_v45  ;;  %v1328_v44 = vld [vmem:[%s1756_s1 + $0x294] ss:$8 sps:$4 sm:$0xff]   ;;  %v1326_v45 = vld [vmem:[%s1756_s1 + $0x290] ss:$8 sps:$4 sm:$0xff]  }
  0x3c   :  { %724 = vmatprep.subr.bf16.mxu1 %v1257_v46  ;;  %v1334_v46 = vld [vmem:[%s1756_s1 + $0x284] ss:$8 sps:$4 sm:$0xff]  }
  0x3e   :  { %684 = vmatpush2.bf16.msra.mxu0 %v1256_v48  ;;  %v47_v48 = vld [vmem:[%s1755_s0 + $0x20] sm:$0xff] }
  0x3f   :  { %685 = vmatprep.subr.bf16.mxu0 %v1260_v50  ;;  %725 = vmatpush2.bf16.msra.mxu1 %v1259_v52  ;;  %v54_v49 = vpack.c.bf16 %v47_v48, %v47_v48  ;;  %v1335_v50 = vld [vmem:[#allocation3 + $0x78] sm:$0xff]   ;;  %v1337_v52 = vld [vmem:[#allocation3 + $0x70] sm:$0xff]  }
  0x40   :  { %726 = vmatprep.subr.bf16.mxu1 %v1263_v54  ;;  %v1339_v54 = vld [vmem:[#allocation3 + $0x68] sm:$0xff]  }
  0x42   :  { %686 = vmatpush2.bf16.msra.mxu0 %v1262_v55  ;;  %v1340_v55 = vld [vmem:[#allocation3 + $0x28] sm:$0xff]  }
  0x43   :  { %687 = vmatprep.subr.bf16.mxu0 %v1266_v56  ;;  %727 = vmatpush2.bf16.msra.mxu1 %v1265_v57  ;;  %v1341_v56 = vld [vmem:[#allocation3 + $0x60] sm:$0xff]  }
  0x44   :  { %728 = vmatprep.subr.bf16.mxu1 %v1269_v58  ;;  %v1342_v57 = vld [vmem:[#allocation3 + $0x20] sm:$0xff]   ;;  %v1343_v58 = vld [vmem:[#allocation3 + $0x58] sm:$0xff]  }
  0x46   :  { %688 = vmatpush2.bf16.msra.mxu0 %v1268_v59  ;;  %v1344_v59 = vld [vmem:[#allocation3 + $0x18] sm:$0xff]  }
  0x47   :  { %689 = vmatprep.subr.bf16.mxu0 %v1272_v60  ;;  %729 = vmatpush2.bf16.msra.mxu1 %v1271_v61  ;;  %v1345_v60 = vld [vmem:[#allocation3 + $0x50] sm:$0xff]  }
  0x48   :  { %730 = vmatprep.subr.bf16.mxu1 %v1275_v62  ;;  %v1346_v61 = vld [vmem:[#allocation3 + $0x10] sm:$0xff]   ;;  %v1347_v62 = vld [vmem:[#allocation3 + $0x48] sm:$0xff]  }
  0x4a   :  { %690 = vmatpush2.bf16.msra.mxu0 %v1274_v63  ;;  %v1348_v63 = vld [vmem:[#allocation3 + $0x8] sm:$0xff]  }
  0x4b   :  { %691 = vmatprep.subr.bf16.mxu0 %v1278_v0  ;;  %731 = vmatpush2.bf16.msra.mxu1 %v1277_v1  ;;  %v1349_v0 = vld [vmem:[#allocation3 + $0x40] sm:$0xff]  }
  0x4c   :  { %732 = vmatprep.subr.bf16.mxu1 %v1281_v3  ;;  %v1350_v1 = vld [vmem:[#allocation3] sm:$0xff]  }
  0x4e   :  { %692 = vmatpush2.bf16.msra.mxu0 %v1280_v2 }
  0x4f   :  { %743 = vmatprep.subr.bf16.mxu0 %v1286_v6  ;;  %733 = vmatpush2.bf16.msra.mxu1 %v1283_v4 }
  0x50   :  { %798 = vmatprep.subr.bf16.mxu1 %v1331_v13 }
  0x51   :  { %694 = vmatmul.mubr.bf16.vlgmr.msra.gmra.mxu0 %v50_v8 }
  0x52   :  { %744 = vmatpush1.bf16.msra.mxu0 %v1284_v9  ;;  %735 = vmatmul.mubr.bf16.vlgmr.msra.gmra.mxu1 %v52_v11 }
  0x53   :  { %745 = vmatprep.subr.bf16.mxu0 %v1289_v10  ;;  %799 = vmatpush1.bf16.msra.mxu1 %v1329_v12 }
  0x54   :  { %816 = vmatprep.mubr.bf16.mxu1 %v1380_v20  ;;  %775 = vmatprep.mubr.bf16.mxu0 %v55_v18 }
  0x55   :  { %1162 = vmatprep.subr.bf16.mxu1 %v1335_v50 }
  0x56   :  { %746 = vmatpush1.bf16.msra.mxu0 %v1287_v14  ;;  %v157_v14 = vlaneseq }
  0x57   :  { %747 = vmatprep.subr.bf16.mxu0 %v1292_v15 }
  0x58   :  { %v158_v15 = vshrl.u32 %v157_v14, 7 }
  0x5a   :  { %748 = vmatpush1.bf16.msra.mxu0 %v1290_v19  ;;  %1143 = vmatmul.mubr.msk.bf16.vlgmr.msra.gmra.mxu1 %vm657_vm0, %v56_v22  ;;  %v159_v16 = vsub.s32 0, %v158_v15  ;;  %v163_v18 = vsub.s32 1, %v158_v15 }
  0x5b   :  { %749 = vmatprep.subr.bf16.mxu0 %v1295_v21  ;;  %1163 = vmatpush3.bf16.msra.mxu1 %v1336_v51 }
  0x5c   :  { %1164 = vmatprep.subr.bf16.mxu1 %v1337_v52  ;;  %v160_v19 = vrot.slane %v155_v17, %v159_v16  ;;  %v164_v20 = vrot.slane %v155_v17, %v163_v18  ;;  %v1161_v52 = vld [vmem:[#allocation2] ss:$0 sm:$0xff] }
  0x5e   :  { %750 = vmatpush1.bf16.msra.mxu0 %v1293_v23 }
  0x5f   :  { %751 = vmatprep.subr.bf16.mxu0 %v1298_v24  ;;  %1165 = vmatpush3.bf16.msra.mxu1 %v1338_v53 }
  0x60   :  { %1166 = vmatprep.subr.bf16.mxu1 %v1339_v54 }
  0x62   :  { %752 = vmatpush1.bf16.msra.mxu0 %v1296_v25 }
  0x63   :  { %753 = vmatprep.subr.bf16.mxu0 %v1301_v26  ;;  %1167 = vmatpush3.bf16.msra.mxu1 %v1340_v55 }
  0x64   :  { %1168 = vmatprep.subr.bf16.mxu1 %v1341_v56 }
  0x66   :  { %754 = vmatpush1.bf16.msra.mxu0 %v1299_v27 }
  0x67   :  { %755 = vmatprep.subr.bf16.mxu0 %v1304_v28  ;;  %1169 = vmatpush3.bf16.msra.mxu1 %v1342_v57 }
  0x68   :  { %1170 = vmatprep.subr.bf16.mxu1 %v1343_v58 }
  0x6a   :  { %756 = vmatpush1.bf16.msra.mxu0 %v1302_v29 }
  0x6b   :  { %757 = vmatprep.subr.bf16.mxu0 %v1307_v30  ;;  %1171 = vmatpush3.bf16.msra.mxu1 %v1344_v59 }
  0x6c   :  { %1172 = vmatprep.subr.bf16.mxu1 %v1345_v60 }
  0x6e   :  { %758 = vmatpush1.bf16.msra.mxu0 %v1305_v31 }
  0x6f   :  { %759 = vmatprep.subr.bf16.mxu0 %v1310_v32  ;;  %1173 = vmatpush3.bf16.msra.mxu1 %v1346_v61 }
  0x70   :  { %1174 = vmatprep.subr.bf16.mxu1 %v1347_v62 }
  0x72   :  { %760 = vmatpush2.bf16.msra.mxu0 %v1308_v33 }
  0x73   :  { %761 = vmatprep.subr.bf16.mxu0 %v1313_v34  ;;  %1175 = vmatpush3.bf16.msra.mxu1 %v1348_v63 }
  0x74   :  { %1176 = vmatprep.subr.bf16.mxu1 %v1349_v0 }
  0x76   :  { %762 = vmatpush2.bf16.msra.mxu0 %v1311_v35 }
  0x77   :  { %763 = vmatprep.subr.bf16.mxu0 %v1316_v36  ;;  %1177 = vmatpush3.bf16.msra.mxu1 %v1350_v1 }
  0x7a   :  { %764 = vmatpush2.bf16.msra.mxu0 %v1314_v37 }
  0x7b   :  { %765 = vmatprep.subr.bf16.mxu0 %v1319_v38 }
  0x7e   :  { %766 = vmatpush2.bf16.msra.mxu0 %v1317_v39  ;;  %v1011_v39 = vld [vmem:[%s1760_s5] sm:$0x1] }
  0x7f   :  { %767 = vmatprep.subr.bf16.mxu0 %v1322_v40 }
  0x82   :  { %768 = vmatpush2.bf16.msra.mxu0 %v1320_v41  ;;  %v1144_v41 = vld [vmem:[%s1759_s4] ss:$0 sm:$0xff] }
  0x83   :  { %769 = vmatprep.subr.bf16.mxu0 %v1325_v42 }
  0x86   :  { %770 = vmatpush2.bf16.msra.mxu0 %v1323_v43  ;;  %v1012_v43 = vunpack.c.l.bf16 %v1011_v39 }
  0x87   :  { %771 = vmatprep.subr.bf16.mxu0 %v1328_v44 }
  0x88   :  { %v1016_v48 = vrot.slane %v1012_v43, %v159_v16 }
  0x8a   :  { %772 = vmatpush2.bf16.msra.mxu0 %v1326_v45 }
  0x8b   :  { %773 = vmatprep.subr.bf16.mxu0 %v1334_v46 }
  0x8e   :  { %774 = vmatpush2.bf16.msra.mxu0 %v1332_v47 }
  0x91   :  { %776 = vmatmul.mubr.bf16.vlgmr.msra.gmra.mxu0 %v54_v49 }
 0x111   :  { %v695_v2 = vpop.f32.mrf.mxu0 }
 0x112   :  { %v736_v4 = vpop.f32.mrf.mxu1  ;;  %v696_v21 = vadd.f32 %v695_v2, %v160_v19 }
 0x113   :  { %v697_v3 = vpop.f32.mrf.mxu0 }
 0x114   :  { %v738_v6 = vpop.f32.mrf.mxu1  ;;  %v698_v22 = vadd.f32 %v697_v3, %v164_v20  ;;  %v737_v23 = vadd.f32 %v736_v4, %v696_v21 }
 0x115   :  { %v699_v5 = vpop.f32.mrf.mxu0 }
 0x116   :  { %v740_v8 = vpop.f32.mrf.mxu1  ;;  %v739_v25 = vadd.f32 %v738_v6, %v698_v22 }
 0x117   :  { %v700_v7 = vpop.f32.mrf.mxu0 }
 0x118   :  { %v741_v9 = vpop.f32.mrf.mxu1 }
 0x11a   :  { %v818_v10 = vpop.f32.mrf.mxu1 }
 0x11c   :  { %v820_v11 = vpop.f32.mrf.mxu1 }
 0x11e   :  { %v822_v12 = vpop.f32.mrf.mxu1 }
 0x120   :  { %v823_v13 = vpop.f32.mrf.mxu1 }
 0x151   :  { %v777_v24 = vpop.f32.mrf.mxu0 }
 0x152   :  { %v778_v26 = vadd.f32 %v777_v24, %v737_v23 }
 0x153   :  { %v779_v27 = vpop.f32.mrf.mxu0 }
 0x154   :  { %v819_v28 = vadd.f32 %v818_v10, %v778_v26  ;;  %v780_v29 = vadd.f32 %v779_v27, %v739_v25 }
 0x155   :  { %v781_v30 = vpop.f32.mrf.mxu0 }
 0x156   :  { %vm825_vm1 = vcmp.gt.f32.partialorder %v819_v28, 0.0  ;;  %v827_v31 = vmul.f32 0.2, %v819_v28  ;;  %v821_v32 = vadd.f32 %v820_v11, %v780_v29 }
 0x157   :  { %v782_v33 = vpop.f32.mrf.mxu0 }
 0x158   :  { %v828_v34 = vmul.f32 0.2, %v821_v32  ;;  %vm826_vm2 = vcmp.gt.f32.partialorder %v821_v32, 0.0  ;;  %v829_v35 = vsel %vm825_vm1, %v819_v28, %v827_v31 }
 0x159   :  { %v831_v38 = vpack.c.bf16 %v829_v35, %v829_v35 }
 0x15a   :  { %v830_v36 = vsel %vm826_vm2, %v821_v32, %v828_v34 }
 0x15b   :  { %v832_v37 = vpack.c.bf16 %v830_v36, %v830_v36 }
 0x15d   :  { %1000 = vmatprep.mubr.bf16.mxu1 %v832_v37 }
 0x15e   :  { %1001 = vmatmul.mubr.bf16.vlgmr.msra.gmra.mxu1 %v831_v38 }
 0x21e   :  { %v1178_v40 = vpop.f32.mrf.mxu1 }
 0x220   :  { %v1179_v42 = vpop.f32.mrf.mxu1 }
 0x221   :  { %v1180_v44 = vadd.f32 %v1179_v42, %v1178_v40 }
 0x222   :  { %v1181_v45 = vpop.f32.mrf.mxu1 }
 0x223   :  { %v1003_v46 = vadd.f32 %v1180_v44, %v1144_v41 }
 0x224   :  { %v1182_v47 = vpop.f32.mrf.mxu1 }
 0x225   :  { %vm1008_vm3 = vcmp.gt.f32.partialorder %v1003_v46, 0.0  ;;  %v1009_v49 = vmul.f32 0.2, %v1003_v46 }
 0x227   :  { %v1010_v50 = vsel %vm1008_vm3, %v1003_v46, %v1009_v49 }
 0x228   :  { %v1017_v51 = vmul.f32 %v1016_v48, %v1010_v50 }
 0x22a   :  { %1018 = vadd.xlane.f32.xlu0 %v1017_v51 }
 0x2b3   :  { %v1019_v53 = vpop.xlane.xlu0 %1018 }
 0x2b4   :  { %v1027_v54 = vadd.f32 %v1161_v52, %v1019_v53 }
 0x2b6   :  { %v1028_v55 = vand.u32 2147483647, %v1027_v54  ;;  %vm1032_vm5 = vcmp.ge.f32.partialorder %v1027_v54, 0.0 }
 0x2b8   :  { %v1029_v56 = vsub.f32 0.0, %v1028_v55 }
 0x2ba   :  { %v1030_v57 = vmul.f32 1.442695, %v1029_v56 }
 0x2bc   :  { %1351 = vpow2.f32 %v1030_v57 }
 0x2c9   :  { %v1352_v58 = vpop.eup %1351 }
 0x2ca   :  { %v1033_v59 = vadd.f32 1.0, %v1352_v58 }
 0x2cc   :  { %1353 = vrcp.f32 %v1033_v59 }
 0x2d9   :  { %v1354_v60 = vpop.eup %1353 }
 0x2da   :  { %v1036_v61 = vmul.f32 %v1354_v60, %v1352_v58 }
 0x2dc   :  { %v1037_v62 = vsel %vm1032_vm5, %v1354_v60, %v1036_v61 }
 0x2dd   :  { %1039 = vst.msk [vmem:[%s1762_s7] sm:$0xff] %vm1038_vm4, %v1037_v62 }
 0x2de   :  { %1044 = vsyncpa [#allocation4], 1 }

</bundles_post_ra>
